<compile_context>
chip_gen: v7x
topology: tpu7x:2x2x1
jax: 0.10.0
libtpu: 0.0.40
codegen_flags: <defaults>
</compile_context>

<pallas_src>
import jax
import jax.numpy as jnp
from jax.experimental import pallas as pl
from jax.experimental.pallas import tpu as pltpu

SUB = 8                      # sublanes per chunk
LANE_CAP = 2048              # max lanes per chunk (multiple of 128)
VMEM_BUDGET = 10 * 1024 * 1024  # keep well under v5e's 16 MiB scoped default


def _make_kernel(N, n_inner, L, num_classes):
    """Kernel closure for static N (valid cells), inner grid size, lanes L."""

    def kernel(p_ref, t_ref, a_ref, out_ref,
               acc_obj, acc_noobj, acc_ce, acc_se, acc_no, acc_nn):
        o = pl.program_id(0)
        i = pl.program_id(1)

        @pl.when(i == 0)
        def _init():
            z = jnp.zeros_like(acc_obj)
            acc_obj[...] = z
            acc_noobj[...] = z
            acc_ce[...] = z
            acc_se[...] = z
            acc_no[...] = z
            acc_nn[...] = z

        p = p_ref[...].astype(jnp.float32)   # (D, 8, L)
        t = t_ref[...].astype(jnp.float32)   # (6, 8, L)
        a = a_ref[...].astype(jnp.float32)   # (2, 8, L)

        # Validity mask for zero-padded tail cells (padding is zeros, so all
        # math below stays finite; invalid lanes are select-masked out).
        chunk = o * n_inner + i
        sub = jax.lax.broadcasted_iota(jnp.int32, (SUB, L), 0)
        lane = jax.lax.broadcasted_iota(jnp.int32, (SUB, L), 1)
        flat = (chunk * SUB + sub) * L + lane
        valid = flat < N

        tobj = t[4]
        obj_m = jnp.logical_and(valid, tobj == 1.0)
        noobj_m = jnp.logical_and(valid, tobj == 0.0)

        # ---- bbox predictions: sigmoid(xy), exp(wh) * anchors (pair stacks) ----
        xy = jax.nn.sigmoid(p[0:2])                      # (2, 8, L)
        wh = jnp.exp(p[2:4]) * a                         # (2, 8, L)
        b1_min = xy - 0.5 * wh
        b1_max = xy + 0.5 * wh
        t_xy = t[0:2]
        t_wh = t[2:4]
        b2_min = t_xy - 0.5 * t_wh
        b2_max = t_xy + 0.5 * t_wh

        ov = jnp.maximum(jnp.minimum(b1_max, b2_max) - jnp.maximum(b1_min, b2_min),
                         0.0)                            # (2, 8, L)
        inter = ov[0] * ov[1]
        d1 = b1_max - b1_min
        d2 = b2_max - b2_min
        area1 = jnp.abs(d1[0] * d1[1])
        area2 = jnp.abs(d2[0] * d2[1])
        ious = inter * pl.reciprocal(area1 + area2 - inter + 1e-6, approx=True)

        # ---- BCE-with-logits on the objectness logit ----
        x = p[4]
        base = jnp.maximum(x, 0.0) + jnp.log1p(jnp.exp(-jnp.abs(x)))
        obj_bce = base - x * ious        # obj cells: target = iou
        # noobj cells: target = 0  ->  bce == base

        # ---- class cross-entropy (reduction over the leading class axis) ----
        logits = p[5:]                                   # (C, 8, L)
        mmax = jnp.max(logits, axis=0)                   # (8, L)
        lse = mmax + jnp.log(jnp.sum(jnp.exp(logits - mmax), axis=0))
        label = t[5].astype(jnp.int32)                   # (8, L)
        z_true = jnp.zeros_like(lse)
        for c in range(num_classes):                     # static, small unroll
            z_true = z_true + jnp.where(label == c, logits[c], 0.0)
        ce = lse - z_true                                # (8, L)

        # ---- bbox squared error on raw preds vs target coords ----
        d = p[0:4] - t[0:4]
        se = jnp.sum(d * d, axis=0)                      # (8, L)

        # ---- per-lane accumulation (full-sublane VPU adds) ----
        zero = jnp.zeros_like(se)
        one = jnp.ones_like(se)
        acc_obj[...] += jnp.where(obj_m, obj_bce, zero)
        acc_noobj[...] += jnp.where(noobj_m, base, zero)
        acc_ce[...] += jnp.where(obj_m, ce, zero)
        acc_se[...] += jnp.where(obj_m, se, zero)
        acc_no[...] += jnp.where(obj_m, one, zero)
        acc_nn[...] += jnp.where(noobj_m, one, zero)

        @pl.when(i == pl.num_programs(1) - 1)
        def _finish():
            vals = (jnp.sum(acc_obj[...]), jnp.sum(acc_noobj[...]),
                    jnp.sum(acc_ce[...]), jnp.sum(acc_se[...]),
                    jnp.sum(acc_no[...]), jnp.sum(acc_nn[...]))
            lane_o = jax.lax.broadcasted_iota(jnp.int32, out_ref.shape, 1)
            out = jnp.zeros(out_ref.shape, jnp.float32)
            for k, v in enumerate(vals):
                out = out + jnp.where(lane_o == k, v, 0.0)
            out_ref[...] = out

    return kernel


@jax.jit
def yolo_loss(preds, targets, anchors):
    """preds: (B, A, 5+C), targets: (B, A, 6), anchors: (1, A, 2)."""
    B, A, D = preds.shape
    C = D - 5
    N = B * A

    # Feature-major, batch-folded layout. Under jit the transpose+pad+reshape
    # is a single fused copy; allow_input_fusion lets XLA fuse it further.
    p2 = preds.reshape(N, D).T                                   # (D, N)
    t2 = targets.reshape(N, 6).T                                 # (6, N)
    a2 = jnp.broadcast_to(anchors, (B, A, 2)).reshape(N, 2).T    # (2, N) -- tiny

    # Lane width per chunk: as large as fits the VMEM budget, shrunk for tiny N.
    L_vmem = (VMEM_BUDGET // (64 * D + 704)) // 128 * 128
    L_cap = max(128, min(LANE_CAP, L_vmem))
    L = min(L_cap, max(128, pl.cdiv(N, SUB * 128) * 128))

    n_chunks = pl.cdiv(N, SUB * L)
    n_outer = 2 if n_chunks >= 2 else 1      # v7x: both TensorCores get work
    n_inner = pl.cdiv(n_chunks, n_outer)
    n_chunks = n_outer * n_inner
    Np = n_chunks * SUB * L

    def relayout(x):                          # (F, N) -> (F, n_chunks, 8, L)
        F = x.shape[0]
        x = jnp.pad(x, ((0, 0), (0, Np - N)))
        return x.reshape(F, n_chunks, SUB, L)

    p4 = relayout(p2)
    t4 = relayout(t2)
    a4 = relayout(a2)

    kernel = _make_kernel(N, n_inner, L, C)
    chunk_idx = lambda o, i: (0, o * n_inner + i, 0, 0)

    partials = pl.pallas_call(
        kernel,
        out_shape=jax.ShapeDtypeStruct((n_outer, SUB, 128), jnp.float32),
        grid_spec=pltpu.PrefetchScalarGridSpec(
            num_scalar_prefetch=0,
            grid=(n_outer, n_inner),
            in_specs=[
                pl.BlockSpec((D, None, SUB, L), chunk_idx),
                pl.BlockSpec((6, None, SUB, L), chunk_idx),
                pl.BlockSpec((2, None, SUB, L), chunk_idx),
            ],
            out_specs=pl.BlockSpec((None, SUB, 128), lambda o, i: (o, 0, 0)),
            scratch_shapes=[pltpu.VMEM((SUB, L), jnp.float32)] * 6,
        ),
        compiler_params=pltpu.CompilerParams(
            dimension_semantics=("parallel", "arbitrary"),
            allow_input_fusion=[True, True, True],
        ),
    )(p4, t4, a4)

    # Combine per-outer-chunk partial sums on the host side (tiny).
    s = jnp.sum(partials[:, 0, :6], axis=0)
    s_obj, s_noobj, s_ce, s_se, n_obj, n_noobj = (s[0], s[1], s[2], s[3], s[4], s[5])
    # NOTE: like the PyTorch reference, assumes there is >=1 obj and >=1 noobj
    # cell overall (otherwise the mean-reduced losses are NaN).
    obj_loss = s_obj / n_obj
    noobj_loss = s_noobj / n_noobj
    class_loss = s_ce / n_obj
    bbox_loss = s_se / (4.0 * n_obj)      # MSELoss averages over all 4*N_obj elems

    obj_lambda, noobj_lambda, class_lambda, bbox_lambda = 2.0, 1.0, 1.0, 2.0
    return (obj_lambda * obj_loss + noobj_lambda * noobj_loss
            + class_lambda * class_loss + bbox_lambda * bbox_loss)


# ----------------------------- pure-JAX reference -----------------------------
def _ref_loss(preds, targets, anchors):
    obj = targets[..., 4] == 1
    noobj = targets[..., 4] == 0
    anchors_b = jnp.broadcast_to(anchors, (preds.shape[0],) + anchors.shape[1:])

    p_o, t_o, a_o = preds[obj], targets[obj], anchors_b[obj]
    bbox_preds = jnp.concatenate(
        [jax.nn.sigmoid(p_o[:, 0:2]), jnp.exp(p_o[:, 2:4]) * a_o], axis=-1)

    def iou_mid(b1, b2):
        b1x1, b1y1 = b1[:, 0] - b1[:, 2] / 2, b1[:, 1] - b1[:, 3] / 2
        b1x2, b1y2 = b1[:, 0] + b1[:, 2] / 2, b1[:, 1] + b1[:, 3] / 2
        b2x1, b2y1 = b2[:, 0] - b2[:, 2] / 2, b2[:, 1] - b2[:, 3] / 2
        b2x2, b2y2 = b2[:, 0] + b2[:, 2] / 2, b2[:, 1] + b2[:, 3] / 2
        inter = (jnp.maximum(jnp.minimum(b1x2, b2x2) - jnp.maximum(b1x1, b2x1), 0)
                 * jnp.maximum(jnp.minimum(b1y2, b2y2) - jnp.maximum(b1y1, b2y1), 0))
        a1 = jnp.abs((b1x2 - b1x1) * (b1y2 - b1y1))
        a2 = jnp.abs((b2x2 - b2x1) * (b2y2 - b2y1))
        return inter / (a1 + a2 - inter + 1e-6)

    ious = iou_mid(bbox_preds, t_o[:, 0:4])

    def bce(x, y):
        return jnp.mean(jnp.maximum(x, 0) - x * y + jnp.log1p(jnp.exp(-jnp.abs(x))))

    obj_loss = bce(p_o[:, 4], ious * t_o[:, 4])
    p_n, t_n = preds[noobj], targets[noobj]
    noobj_loss = bce(p_n[:, 4], t_n[:, 4])
    logits, labels = p_o[:, 5:], t_o[:, 5].astype(jnp.int32)
    class_loss = jnp.mean(jax.nn.logsumexp(logits, axis=-1)
                          - jnp.take_along_axis(logits, labels[:, None], axis=-1)[:, 0])
    bbox_loss = jnp.mean((p_o[:, 0:4] - t_o[:, 0:4]) ** 2)
    return 2.0 * obj_loss + 1.0 * noobj_loss + 1.0 * class_loss + 2.0 * bbox_loss


if __name__ == "__main__":
    key = jax.random.PRNGKey(0)
    k1, k2, k3, k4, k5 = jax.random.split(key, 5)

    # Deterministic "module parameters": 9 anchors, small scales.
    base_anchors = jnp.array(
        [[0.28, 0.22], [0.38, 0.48], [0.90, 0.78],
         [0.07, 0.15], [0.15, 0.11], [0.14, 0.29],
         [0.02, 0.03], [0.04, 0.07], [0.08, 0.06]], dtype=jnp.float32)
    scales = (4, 2, 1)
    anchors = jnp.concatenate(
        [jnp.tile(base_anchors[0:3], (scales[0] ** 2, 1)),
         jnp.tile(base_anchors[3:6], (scales[1] ** 2, 1)),
         jnp.tile(base_anchors[6:9], (scales[2] ** 2, 1))], axis=0)[None]  # (1, A, 2)

    B = 2
    A = anchors.shape[1]          # 3 * (16 + 4 + 1) = 63
    num_classes = 4
    D = 5 + num_classes

    preds = jax.random.normal(k1, (B, A, D), dtype=jnp.float32)

    obj_flag = jax.random.bernoulli(k2, 0.3, (B, A)).astype(jnp.float32)
    obj_flag = obj_flag.at[:, 0].set(1.0)  # guarantee at least one obj cell
    coords = jax.random.uniform(k3, (B, A, 4), minval=0.05, maxval=0.95)
    labels = jax.random.randint(k4, (B, A, 1), 0, num_classes).astype(jnp.float32)
    targets = jnp.concatenate([coords, obj_flag[..., None], labels], axis=-1)

    loss = jax.block_until_ready(yolo_loss(preds, targets, anchors))
    ref = jax.block_until_ready(_ref_loss(preds, targets, anchors))

    assert jnp.isfinite(loss), "kernel produced non-finite loss"
    assert abs(float(loss) - float(ref)) <= 1e-3 * max(1.0, abs(float(ref))), \
        f"mismatch: kernel={float(loss)} ref={float(ref)}"
    print("KERNEL_OK")
</pallas_src>

<mosaic_0001>
module attributes {stable_mosaic.version = 11 : i64} {
  func.func @kernel(%arg0: i32, %arg1: i32, %arg2: memref<9x1x8x128xf32, #tpu.memory_space<vmem>>, %arg3: memref<6x1x8x128xf32, #tpu.memory_space<vmem>>, %arg4: memref<2x1x8x128xf32, #tpu.memory_space<vmem>>, %arg5: memref<1x8x128xf32, #tpu.memory_space<vmem>>, %arg6: memref<8x128xf32, #tpu.memory_space<vmem>>, %arg7: memref<8x128xf32, #tpu.memory_space<vmem>>, %arg8: memref<8x128xf32, #tpu.memory_space<vmem>>, %arg9: memref<8x128xf32, #tpu.memory_space<vmem>>, %arg10: memref<8x128xf32, #tpu.memory_space<vmem>>, %arg11: memref<8x128xf32, #tpu.memory_space<vmem>>) attributes {dimension_semantics = [#tpu.dimension_semantics<parallel>, #tpu.dimension_semantics<arbitrary>], iteration_bounds = array<i64: 1, 1>, scalar_prefetch = 0 : i64, scratch_operands = 6 : i64, tpu.core_type = #tpu.core_type<tc>, window_params = [{transform_indices = @transform_0, window_bounds = array<i64: 9, 1, 8, 128>}, {transform_indices = @transform_1, window_bounds = array<i64: 6, 1, 8, 128>}, {transform_indices = @transform_2, window_bounds = array<i64: 2, 1, 8, 128>}, {transform_indices = @transform_3, window_bounds = array<i64: 1, 8, 128>}]} {
    %c0_i32 = arith.constant 0 : i32
    %0 = arith.cmpi eq, %arg1, %c0_i32 : i32
    %1 = arith.extui %0 : i1 to i32
    %c0_i32_0 = arith.constant 0 : i32
    %2 = arith.cmpi ne, %1, %c0_i32_0 : i32
    scf.if %2 {
      %cst_60 = arith.constant 0.000000e+00 : f32
      %170 = vector.broadcast %cst_60 : f32 to vector<8x128xf32>
      %c0_61 = arith.constant 0 : index
      %c0_62 = arith.constant 0 : index
      %171 = vector.load %arg6[%c0_61, %c0_62] : memref<8x128xf32, #tpu.memory_space<vmem>>, vector<8x128xf32>
      tpu.vector_store %arg6[%c0_61, %c0_62], %170 {strides = array<i32>} : memref<8x128xf32, #tpu.memory_space<vmem>>, vector<8x128xf32>,
      %c0_63 = arith.constant 0 : index
      %c0_64 = arith.constant 0 : index
      %172 = vector.load %arg7[%c0_63, %c0_64] : memref<8x128xf32, #tpu.memory_space<vmem>>, vector<8x128xf32>
      tpu.vector_store %arg7[%c0_63, %c0_64], %170 {strides = array<i32>} : memref<8x128xf32, #tpu.memory_space<vmem>>, vector<8x128xf32>,
      %c0_65 = arith.constant 0 : index
      %c0_66 = arith.constant 0 : index
      %173 = vector.load %arg8[%c0_65, %c0_66] : memref<8x128xf32, #tpu.memory_space<vmem>>, vector<8x128xf32>
      tpu.vector_store %arg8[%c0_65, %c0_66], %170 {strides = array<i32>} : memref<8x128xf32, #tpu.memory_space<vmem>>, vector<8x128xf32>,
      %c0_67 = arith.constant 0 : index
      %c0_68 = arith.constant 0 : index
      %174 = vector.load %arg9[%c0_67, %c0_68] : memref<8x128xf32, #tpu.memory_space<vmem>>, vector<8x128xf32>
      tpu.vector_store %arg9[%c0_67, %c0_68], %170 {strides = array<i32>} : memref<8x128xf32, #tpu.memory_space<vmem>>, vector<8x128xf32>,
      %c0_69 = arith.constant 0 : index
      %c0_70 = arith.constant 0 : index
      %175 = vector.load %arg10[%c0_69, %c0_70] : memref<8x128xf32, #tpu.memory_space<vmem>>, vector<8x128xf32>
      tpu.vector_store %arg10[%c0_69, %c0_70], %170 {strides = array<i32>} : memref<8x128xf32, #tpu.memory_space<vmem>>, vector<8x128xf32>,
      %c0_71 = arith.constant 0 : index
      %c0_72 = arith.constant 0 : index
      %176 = vector.load %arg11[%c0_71, %c0_72] : memref<8x128xf32, #tpu.memory_space<vmem>>, vector<8x128xf32>
      tpu.vector_store %arg11[%c0_71, %c0_72], %170 {strides = array<i32>} : memref<8x128xf32, #tpu.memory_space<vmem>>, vector<8x128xf32>,
    } else {
    }
    %c0 = arith.constant 0 : index
    %c0_1 = arith.constant 0 : index
    %c0_2 = arith.constant 0 : index
    %c0_3 = arith.constant 0 : index
    %3 = vector.load %arg2[%c0, %c0_1, %c0_2, %c0_3] : memref<9x1x8x128xf32, #tpu.memory_space<vmem>>, vector<9x1x8x128xf32>
    %4 = vector.shape_cast %3 : vector<9x1x8x128xf32> to vector<9x8x128xf32>
    %c0_4 = arith.constant 0 : index
    %c0_5 = arith.constant 0 : index
    %c0_6 = arith.constant 0 : index
    %c0_7 = arith.constant 0 : index
    %5 = vector.load %arg3[%c0_4, %c0_5, %c0_6, %c0_7] : memref<6x1x8x128xf32, #tpu.memory_space<vmem>>, vector<6x1x8x128xf32>
    %6 = vector.shape_cast %5 : vector<6x1x8x128xf32> to vector<6x8x128xf32>
    %c0_8 = arith.constant 0 : index
    %c0_9 = arith.constant 0 : index
    %c0_10 = arith.constant 0 : index
    %c0_11 = arith.constant 0 : index
    %7 = vector.load %arg4[%c0_8, %c0_9, %c0_10, %c0_11] : memref<2x1x8x128xf32, #tpu.memory_space<vmem>>, vector<2x1x8x128xf32>
    %8 = vector.shape_cast %7 : vector<2x1x8x128xf32> to vector<2x8x128xf32>
    %c1_i32 = arith.constant 1 : i32
    %9 = arith.muli %arg0, %c1_i32 : i32
    %10 = arith.addi %9, %arg1 : i32
    %11 = tpu.iota {dimensions = array<i32: 0>} : vector<8x128xi32>
    %12 = tpu.iota {dimensions = array<i32: 1>} : vector<8x128xi32>
    %c8_i32 = arith.constant 8 : i32
    %13 = arith.muli %10, %c8_i32 : i32
    %14 = vector.broadcast %13 : i32 to vector<8x128xi32>
    %15 = arith.addi %14, %11 : vector<8x128xi32>
    %c128_i32 = arith.constant 128 : i32
    %16 = vector.broadcast %c128_i32 : i32 to vector<8x128xi32>
    %17 = arith.muli %15, %16 : vector<8x128xi32>
    %18 = arith.addi %17, %12 : vector<8x128xi32>
    %c126_i32 = arith.constant 126 : i32
    %19 = vector.broadcast %c126_i32 : i32 to vector<8x128xi32>
    %20 = arith.cmpi slt, %18, %19 : vector<8x128xi32>
    %21 = vector.extract_strided_slice %6 {offsets = [4, 0, 0], sizes = [1, 8, 128], strides = [1, 1, 1]} : vector<6x8x128xf32> to vector<1x8x128xf32>
    %22 = vector.shape_cast %21 : vector<1x8x128xf32> to vector<8x128xf32>
    %cst = arith.constant 1.000000e+00 : f32
    %23 = vector.broadcast %cst : f32 to vector<8x128xf32>
    %24 = arith.cmpf oeq, %22, %23 : vector<8x128xf32>
    %25 = arith.andi %20, %24 : vector<8x128xi1>
    %cst_12 = arith.constant 0.000000e+00 : f32
    %26 = vector.broadcast %cst_12 : f32 to vector<8x128xf32>
    %27 = arith.cmpf oeq, %22, %26 : vector<8x128xf32>
    %28 = arith.andi %20, %27 : vector<8x128xi1>
    %29 = vector.extract_strided_slice %4 {offsets = [0, 0, 0], sizes = [2, 8, 128], strides = [1, 1, 1]} : vector<9x8x128xf32> to vector<2x8x128xf32>
    %30 = arith.negf %29 : vector<2x8x128xf32>
    %31 = math.exp %30 : vector<2x8x128xf32>
    %cst_13 = arith.constant 1.000000e+00 : f32
    %32 = vector.broadcast %cst_13 : f32 to vector<2x8x128xf32>
    %33 = arith.addf %32, %31 : vector<2x8x128xf32>
    %34 = arith.divf %32, %33 : vector<2x8x128xf32>
    %35 = vector.extract_strided_slice %4 {offsets = [2, 0, 0], sizes = [2, 8, 128], strides = [1, 1, 1]} : vector<9x8x128xf32> to vector<2x8x128xf32>
    %36 = math.exp %35 : vector<2x8x128xf32>
    %37 = arith.mulf %36, %8 : vector<2x8x128xf32>
    %cst_14 = arith.constant 5.000000e-01 : f32
    %38 = vector.broadcast %cst_14 : f32 to vector<2x8x128xf32>
    %39 = arith.mulf %38, %37 : vector<2x8x128xf32>
    %40 = arith.subf %34, %39 : vector<2x8x128xf32>
    %cst_15 = arith.constant 5.000000e-01 : f32
    %41 = vector.broadcast %cst_15 : f32 to vector<2x8x128xf32>
    %42 = arith.mulf %41, %37 : vector<2x8x128xf32>
    %43 = arith.addf %34, %42 : vector<2x8x128xf32>
    %44 = vector.extract_strided_slice %6 {offsets = [0, 0, 0], sizes = [2, 8, 128], strides = [1, 1, 1]} : vector<6x8x128xf32> to vector<2x8x128xf32>
    %45 = vector.extract_strided_slice %6 {offsets = [2, 0, 0], sizes = [2, 8, 128], strides = [1, 1, 1]} : vector<6x8x128xf32> to vector<2x8x128xf32>
    %cst_16 = arith.constant 5.000000e-01 : f32
    %46 = vector.broadcast %cst_16 : f32 to vector<2x8x128xf32>
    %47 = arith.mulf %46, %45 : vector<2x8x128xf32>
    %48 = arith.subf %44, %47 : vector<2x8x128xf32>
    %cst_17 = arith.constant 5.000000e-01 : f32
    %49 = vector.broadcast %cst_17 : f32 to vector<2x8x128xf32>
    %50 = arith.mulf %49, %45 : vector<2x8x128xf32>
    %51 = arith.addf %44, %50 : vector<2x8x128xf32>
    %52 = arith.minimumf %43, %51 : vector<2x8x128xf32>
    %53 = arith.maximumf %40, %48 : vector<2x8x128xf32>
    %54 = arith.subf %52, %53 : vector<2x8x128xf32>
    %cst_18 = arith.constant 0.000000e+00 : f32
    %55 = vector.broadcast %cst_18 : f32 to vector<2x8x128xf32>
    %56 = arith.maximumf %54, %55 : vector<2x8x128xf32>
    %57 = vector.extract_strided_slice %56 {offsets = [0, 0, 0], sizes = [1, 8, 128], strides = [1, 1, 1]} : vector<2x8x128xf32> to vector<1x8x128xf32>
    %58 = vector.shape_cast %57 : vector<1x8x128xf32> to vector<8x128xf32>
    %59 = vector.extract_strided_slice %56 {offsets = [1, 0, 0], sizes = [1, 8, 128], strides = [1, 1, 1]} : vector<2x8x128xf32> to vector<1x8x128xf32>
    %60 = vector.shape_cast %59 : vector<1x8x128xf32> to vector<8x128xf32>
    %61 = arith.mulf %58, %60 : vector<8x128xf32>
    %62 = arith.subf %43, %40 : vector<2x8x128xf32>
    %63 = arith.subf %51, %48 : vector<2x8x128xf32>
    %64 = vector.extract_strided_slice %62 {offsets = [0, 0, 0], sizes = [1, 8, 128], strides = [1, 1, 1]} : vector<2x8x128xf32> to vector<1x8x128xf32>
    %65 = vector.shape_cast %64 : vector<1x8x128xf32> to vector<8x128xf32>
    %66 = vector.extract_strided_slice %62 {offsets = [1, 0, 0], sizes = [1, 8, 128], strides = [1, 1, 1]} : vector<2x8x128xf32> to vector<1x8x128xf32>
    %67 = vector.shape_cast %66 : vector<1x8x128xf32> to vector<8x128xf32>
    %68 = arith.mulf %65, %67 : vector<8x128xf32>
    %69 = math.absf %68 : vector<8x128xf32>
    %70 = vector.extract_strided_slice %63 {offsets = [0, 0, 0], sizes = [1, 8, 128], strides = [1, 1, 1]} : vector<2x8x128xf32> to vector<1x8x128xf32>
    %71 = vector.shape_cast %70 : vector<1x8x128xf32> to vector<8x128xf32>
    %72 = vector.extract_strided_slice %63 {offsets = [1, 0, 0], sizes = [1, 8, 128], strides = [1, 1, 1]} : vector<2x8x128xf32> to vector<1x8x128xf32>
    %73 = vector.shape_cast %72 : vector<1x8x128xf32> to vector<8x128xf32>
    %74 = arith.mulf %71, %73 : vector<8x128xf32>
    %75 = math.absf %74 : vector<8x128xf32>
    %76 = arith.addf %69, %75 : vector<8x128xf32>
    %77 = arith.subf %76, %61 : vector<8x128xf32>
    %cst_19 = arith.constant 9.99999997E-7 : f32
    %78 = vector.broadcast %cst_19 : f32 to vector<8x128xf32>
    %79 = arith.addf %77, %78 : vector<8x128xf32>
    %80 = tpu.reciprocal %79 {approx = true} : vector<8x128xf32> -> vector<8x128xf32>
    %81 = arith.mulf %61, %80 : vector<8x128xf32>
    %82 = vector.extract_strided_slice %4 {offsets = [4, 0, 0], sizes = [1, 8, 128], strides = [1, 1, 1]} : vector<9x8x128xf32> to vector<1x8x128xf32>
    %83 = vector.shape_cast %82 : vector<1x8x128xf32> to vector<8x128xf32>
    %cst_20 = arith.constant 0.000000e+00 : f32
    %84 = vector.broadcast %cst_20 : f32 to vector<8x128xf32>
    %85 = arith.maximumf %83, %84 : vector<8x128xf32>
    %86 = math.absf %83 : vector<8x128xf32>
    %cst_21 = arith.constant 0.000000e+00 : f32
    %87 = vector.broadcast %cst_21 : f32 to vector<8x128xf32>
    %88 = arith.subf %87, %86 : vector<8x128xf32>
    %89 = math.exp %88 : vector<8x128xf32>
    %90 = math.log1p %89 : vector<8x128xf32>
    %91 = arith.addf %85, %90 : vector<8x128xf32>
    %92 = arith.mulf %83, %81 : vector<8x128xf32>
    %93 = arith.subf %91, %92 : vector<8x128xf32>
    %94 = vector.extract_strided_slice %4 {offsets = [5, 0, 0], sizes = [4, 8, 128], strides = [1, 1, 1]} : vector<9x8x128xf32> to vector<4x8x128xf32>
    %cst_22 = arith.constant dense<0xFF800000> : vector<8x128xf32>
    %95 = vector.multi_reduction <maximumf>, %94, %cst_22 [0] : vector<4x8x128xf32> to vector<8x128xf32>
    %96 = vector.shape_cast %95 : vector<8x128xf32> to vector<1x8x128xf32>
    %97 = vector.broadcast %96 : vector<1x8x128xf32> to vector<4x8x128xf32>
    %98 = arith.subf %94, %97 : vector<4x8x128xf32>
    %99 = math.exp %98 : vector<4x8x128xf32>
    %cst_23 = arith.constant dense<0.000000e+00> : vector<8x128xf32>
    %100 = vector.multi_reduction <add>, %99, %cst_23 [0] : vector<4x8x128xf32> to vector<8x128xf32>
    %101 = math.log %100 : vector<8x128xf32>
    %102 = arith.addf %95, %101 : vector<8x128xf32>
    %103 = vector.extract_strided_slice %6 {offsets = [5, 0, 0], sizes = [1, 8, 128], strides = [1, 1, 1]} : vector<6x8x128xf32> to vector<1x8x128xf32>
    %104 = vector.shape_cast %103 : vector<1x8x128xf32> to vector<8x128xf32>
    %105 = arith.fptosi %104 : vector<8x128xf32> to vector<8x128xi32>
    %cst_24 = arith.constant 0.000000e+00 : f32
    %106 = vector.broadcast %cst_24 : f32 to vector<8x128xf32>
    %c0_i32_25 = arith.constant 0 : i32
    %107 = vector.broadcast %c0_i32_25 : i32 to vector<8x128xi32>
    %108 = arith.cmpi eq, %105, %107 : vector<8x128xi32>
    %109 = vector.extract_strided_slice %94 {offsets = [0, 0, 0], sizes = [1, 8, 128], strides = [1, 1, 1]} : vector<4x8x128xf32> to vector<1x8x128xf32>
    %110 = vector.shape_cast %109 : vector<1x8x128xf32> to vector<8x128xf32>
    %cst_26 = arith.constant 0.000000e+00 : f32
    %111 = vector.broadcast %cst_26 : f32 to vector<8x128xf32>
    %112 = arith.select %108, %110, %111 : vector<8x128xi1>, vector<8x128xf32>
    %113 = arith.addf %106, %112 : vector<8x128xf32>
    %c1_i32_27 = arith.constant 1 : i32
    %114 = vector.broadcast %c1_i32_27 : i32 to vector<8x128xi32>
    %115 = arith.cmpi eq, %105, %114 : vector<8x128xi32>
    %116 = vector.extract_strided_slice %94 {offsets = [1, 0, 0], sizes = [1, 8, 128], strides = [1, 1, 1]} : vector<4x8x128xf32> to vector<1x8x128xf32>
    %117 = vector.shape_cast %116 : vector<1x8x128xf32> to vector<8x128xf32>
    %cst_28 = arith.constant 0.000000e+00 : f32
    %118 = vector.broadcast %cst_28 : f32 to vector<8x128xf32>
    %119 = arith.select %115, %117, %118 : vector<8x128xi1>, vector<8x128xf32>
    %120 = arith.addf %113, %119 : vector<8x128xf32>
    %c2_i32 = arith.constant 2 : i32
    %121 = vector.broadcast %c2_i32 : i32 to vector<8x128xi32>
    %122 = arith.cmpi eq, %105, %121 : vector<8x128xi32>
    %123 = vector.extract_strided_slice %94 {offsets = [2, 0, 0], sizes = [1, 8, 128], strides = [1, 1, 1]} : vector<4x8x128xf32> to vector<1x8x128xf32>
    %124 = vector.shape_cast %123 : vector<1x8x128xf32> to vector<8x128xf32>
    %cst_29 = arith.constant 0.000000e+00 : f32
    %125 = vector.broadcast %cst_29 : f32 to vector<8x128xf32>
    %126 = arith.select %122, %124, %125 : vector<8x128xi1>, vector<8x128xf32>
    %127 = arith.addf %120, %126 : vector<8x128xf32>
    %c3_i32 = arith.constant 3 : i32
    %128 = vector.broadcast %c3_i32 : i32 to vector<8x128xi32>
    %129 = arith.cmpi eq, %105, %128 : vector<8x128xi32>
    %130 = vector.extract_strided_slice %94 {offsets = [3, 0, 0], sizes = [1, 8, 128], strides = [1, 1, 1]} : vector<4x8x128xf32> to vector<1x8x128xf32>
    %131 = vector.shape_cast %130 : vector<1x8x128xf32> to vector<8x128xf32>
    %cst_30 = arith.constant 0.000000e+00 : f32
    %132 = vector.broadcast %cst_30 : f32 to vector<8x128xf32>
    %133 = arith.select %129, %131, %132 : vector<8x128xi1>, vector<8x128xf32>
    %134 = arith.addf %127, %133 : vector<8x128xf32>
    %135 = arith.subf %102, %134 : vector<8x128xf32>
    %136 = vector.extract_strided_slice %4 {offsets = [0, 0, 0], sizes = [4, 8, 128], strides = [1, 1, 1]} : vector<9x8x128xf32> to vector<4x8x128xf32>
    %137 = vector.extract_strided_slice %6 {offsets = [0, 0, 0], sizes = [4, 8, 128], strides = [1, 1, 1]} : vector<6x8x128xf32> to vector<4x8x128xf32>
    %138 = arith.subf %136, %137 : vector<4x8x128xf32>
    %139 = arith.mulf %138, %138 : vector<4x8x128xf32>
    %cst_31 = arith.constant dense<0.000000e+00> : vector<8x128xf32>
    %140 = vector.multi_reduction <add>, %139, %cst_31 [0] : vector<4x8x128xf32> to vector<8x128xf32>
    %cst_32 = arith.constant 0.000000e+00 : f32
    %141 = vector.broadcast %cst_32 : f32 to vector<8x128xf32>
    %cst_33 = arith.constant 1.000000e+00 : f32
    %142 = vector.broadcast %cst_33 : f32 to vector<8x128xf32>
    %c0_34 = arith.constant 0 : index
    %c0_35 = arith.constant 0 : index
    %143 = vector.load %arg6[%c0_34, %c0_35] : memref<8x128xf32, #tpu.memory_space<vmem>>, vector<8x128xf32>
    %144 = arith.select %25, %93, %141 : vector<8x128xi1>, vector<8x128xf32>
    %145 = arith.addf %143, %144 : vector<8x128xf32>
    %c0_36 = arith.constant 0 : index
    %c0_37 = arith.constant 0 : index
    %146 = vector.load %arg6[%c0_36, %c0_37] : memref<8x128xf32, #tpu.memory_space<vmem>>, vector<8x128xf32>
    tpu.vector_store %arg6[%c0_36, %c0_37], %145 {strides = array<i32>} : memref<8x128xf32, #tpu.memory_space<vmem>>, vector<8x128xf32>,
    %c0_38 = arith.constant 0 : index
    %c0_39 = arith.constant 0 : index
    %147 = vector.load %arg7[%c0_38, %c0_39] : memref<8x128xf32, #tpu.memory_space<vmem>>, vector<8x128xf32>
    %148 = arith.select %28, %91, %141 : vector<8x128xi1>, vector<8x128xf32>
    %149 = arith.addf %147, %148 : vector<8x128xf32>
    %c0_40 = arith.constant 0 : index
    %c0_41 = arith.constant 0 : index
    %150 = vector.load %arg7[%c0_40, %c0_41] : memref<8x128xf32, #tpu.memory_space<vmem>>, vector<8x128xf32>
    tpu.vector_store %arg7[%c0_40, %c0_41], %149 {strides = array<i32>} : memref<8x128xf32, #tpu.memory_space<vmem>>, vector<8x128xf32>,
    %c0_42 = arith.constant 0 : index
    %c0_43 = arith.constant 0 : index
    %151 = vector.load %arg8[%c0_42, %c0_43] : memref<8x128xf32, #tpu.memory_space<vmem>>, vector<8x128xf32>
    %152 = arith.select %25, %135, %141 : vector<8x128xi1>, vector<8x128xf32>
    %153 = arith.addf %151, %152 : vector<8x128xf32>
    %c0_44 = arith.constant 0 : index
    %c0_45 = arith.constant 0 : index
    %154 = vector.load %arg8[%c0_44, %c0_45] : memref<8x128xf32, #tpu.memory_space<vmem>>, vector<8x128xf32>
    tpu.vector_store %arg8[%c0_44, %c0_45], %153 {strides = array<i32>} : memref<8x128xf32, #tpu.memory_space<vmem>>, vector<8x128xf32>,
    %c0_46 = arith.constant 0 : index
    %c0_47 = arith.constant 0 : index
    %155 = vector.load %arg9[%c0_46, %c0_47] : memref<8x128xf32, #tpu.memory_space<vmem>>, vector<8x128xf32>
    %156 = arith.select %25, %140, %141 : vector<8x128xi1>, vector<8x128xf32>
    %157 = arith.addf %155, %156 : vector<8x128xf32>
    %c0_48 = arith.constant 0 : index
    %c0_49 = arith.constant 0 : index
    %158 = vector.load %arg9[%c0_48, %c0_49] : memref<8x128xf32, #tpu.memory_space<vmem>>, vector<8x128xf32>
    tpu.vector_store %arg9[%c0_48, %c0_49], %157 {strides = array<i32>} : memref<8x128xf32, #tpu.memory_space<vmem>>, vector<8x128xf32>,
    %c0_50 = arith.constant 0 : index
    %c0_51 = arith.constant 0 : index
    %159 = vector.load %arg10[%c0_50, %c0_51] : memref<8x128xf32, #tpu.memory_space<vmem>>, vector<8x128xf32>
    %160 = arith.select %25, %142, %141 : vector<8x128xi1>, vector<8x128xf32>
    %161 = arith.addf %159, %160 : vector<8x128xf32>
    %c0_52 = arith.constant 0 : index
    %c0_53 = arith.constant 0 : index
    %162 = vector.load %arg10[%c0_52, %c0_53] : memref<8x128xf32, #tpu.memory_space<vmem>>, vector<8x128xf32>
    tpu.vector_store %arg10[%c0_52, %c0_53], %161 {strides = array<i32>} : memref<8x128xf32, #tpu.memory_space<vmem>>, vector<8x128xf32>,
    %c0_54 = arith.constant 0 : index
    %c0_55 = arith.constant 0 : index
    %163 = vector.load %arg11[%c0_54, %c0_55] : memref<8x128xf32, #tpu.memory_space<vmem>>, vector<8x128xf32>
    %164 = arith.select %28, %142, %141 : vector<8x128xi1>, vector<8x128xf32>
    %165 = arith.addf %163, %164 : vector<8x128xf32>
    %c0_56 = arith.constant 0 : index
    %c0_57 = arith.constant 0 : index
    %166 = vector.load %arg11[%c0_56, %c0_57] : memref<8x128xf32, #tpu.memory_space<vmem>>, vector<8x128xf32>
    tpu.vector_store %arg11[%c0_56, %c0_57], %165 {strides = array<i32>} : memref<8x128xf32, #tpu.memory_space<vmem>>, vector<8x128xf32>,
    %c0_i32_58 = arith.constant 0 : i32
    %167 = arith.cmpi eq, %arg1, %c0_i32_58 : i32
    %168 = arith.extui %167 : i1 to i32
    %c0_i32_59 = arith.constant 0 : i32
    %169 = arith.cmpi ne, %168, %c0_i32_59 : i32
    scf.if %169 {
      %c0_60 = arith.constant 0 : index
      %c0_61 = arith.constant 0 : index
      %170 = vector.load %arg6[%c0_60, %c0_61] : memref<8x128xf32, #tpu.memory_space<vmem>>, vector<8x128xf32>
      %171 = vector.shape_cast %170 : vector<8x128xf32> to vector<1x8x128xf32>
      %cst_62 = arith.constant dense<0.000000e+00> : vector<1xf32>
      %172 = vector.multi_reduction <add>, %171, %cst_62 [1, 2] : vector<1x8x128xf32> to vector<1xf32>
      %173 = vector.shape_cast %172 : vector<1xf32> to vector<1x1x1xf32>
      %174 = vector.extract %173[0, 0, 0] : f32 from vector<1x1x1xf32>
      %c0_63 = arith.constant 0 : index
      %c0_64 = arith.constant 0 : index
      %175 = vector.load %arg7[%c0_63, %c0_64] : memref<8x128xf32, #tpu.memory_space<vmem>>, vector<8x128xf32>
      %176 = vector.shape_cast %175 : vector<8x128xf32> to vector<1x8x128xf32>
      %cst_65 = arith.constant dense<0.000000e+00> : vector<1xf32>
      %177 = vector.multi_reduction <add>, %176, %cst_65 [1, 2] : vector<1x8x128xf32> to vector<1xf32>
      %178 = vector.shape_cast %177 : vector<1xf32> to vector<1x1x1xf32>
      %179 = vector.extract %178[0, 0, 0] : f32 from vector<1x1x1xf32>
      %c0_66 = arith.constant 0 : index
      %c0_67 = arith.constant 0 : index
      %180 = vector.load %arg8[%c0_66, %c0_67] : memref<8x128xf32, #tpu.memory_space<vmem>>, vector<8x128xf32>
      %181 = vector.shape_cast %180 : vector<8x128xf32> to vector<1x8x128xf32>
      %cst_68 = arith.constant dense<0.000000e+00> : vector<1xf32>
      %182 = vector.multi_reduction <add>, %181, %cst_68 [1, 2] : vector<1x8x128xf32> to vector<1xf32>
      %183 = vector.shape_cast %182 : vector<1xf32> to vector<1x1x1xf32>
      %184 = vector.extract %183[0, 0, 0] : f32 from vector<1x1x1xf32>
      %c0_69 = arith.constant 0 : index
      %c0_70 = arith.constant 0 : index
      %185 = vector.load %arg9[%c0_69, %c0_70] : memref<8x128xf32, #tpu.memory_space<vmem>>, vector<8x128xf32>
      %186 = vector.shape_cast %185 : vector<8x128xf32> to vector<1x8x128xf32>
      %cst_71 = arith.constant dense<0.000000e+00> : vector<1xf32>
      %187 = vector.multi_reduction <add>, %186, %cst_71 [1, 2] : vector<1x8x128xf32> to vector<1xf32>
      %188 = vector.shape_cast %187 : vector<1xf32> to vector<1x1x1xf32>
      %189 = vector.extract %188[0, 0, 0] : f32 from vector<1x1x1xf32>
      %c0_72 = arith.constant 0 : index
      %c0_73 = arith.constant 0 : index
      %190 = vector.load %arg10[%c0_72, %c0_73] : memref<8x128xf32, #tpu.memory_space<vmem>>, vector<8x128xf32>
      %191 = vector.shape_cast %190 : vector<8x128xf32> to vector<1x8x128xf32>
      %cst_74 = arith.constant dense<0.000000e+00> : vector<1xf32>
      %192 = vector.multi_reduction <add>, %191, %cst_74 [1, 2] : vector<1x8x128xf32> to vector<1xf32>
      %193 = vector.shape_cast %192 : vector<1xf32> to vector<1x1x1xf32>
      %194 = vector.extract %193[0, 0, 0] : f32 from vector<1x1x1xf32>
      %c0_75 = arith.constant 0 : index
      %c0_76 = arith.constant 0 : index
      %195 = vector.load %arg11[%c0_75, %c0_76] : memref<8x128xf32, #tpu.memory_space<vmem>>, vector<8x128xf32>
      %196 = vector.shape_cast %195 : vector<8x128xf32> to vector<1x8x128xf32>
      %cst_77 = arith.constant dense<0.000000e+00> : vector<1xf32>
      %197 = vector.multi_reduction <add>, %196, %cst_77 [1, 2] : vector<1x8x128xf32> to vector<1xf32>
      %198 = vector.shape_cast %197 : vector<1xf32> to vector<1x1x1xf32>
      %199 = vector.extract %198[0, 0, 0] : f32 from vector<1x1x1xf32>
      %200 = tpu.iota {dimensions = array<i32: 1>} : vector<8x128xi32>
      %cst_78 = arith.constant 0.000000e+00 : f32
      %201 = vector.broadcast %cst_78 : f32 to vector<8x128xf32>
      %c0_i32_79 = arith.constant 0 : i32
      %202 = vector.broadcast %c0_i32_79 : i32 to vector<8x128xi32>
      %203 = arith.cmpi eq, %200, %202 : vector<8x128xi32>
      %cst_80 = arith.constant 0.000000e+00 : f32
      %204 = vector.broadcast %174 : f32 to vector<8x128xf32>
      %205 = vector.broadcast %cst_80 : f32 to vector<8x128xf32>
      %206 = arith.select %203, %204, %205 : vector<8x128xi1>, vector<8x128xf32>
      %207 = arith.addf %201, %206 : vector<8x128xf32>
      %c1_i32_81 = arith.constant 1 : i32
      %208 = vector.broadcast %c1_i32_81 : i32 to vector<8x128xi32>
      %209 = arith.cmpi eq, %200, %208 : vector<8x128xi32>
      %cst_82 = arith.constant 0.000000e+00 : f32
      %210 = vector.broadcast %179 : f32 to vector<8x128xf32>
      %211 = vector.broadcast %cst_82 : f32 to vector<8x128xf32>
      %212 = arith.select %209, %210, %211 : vector<8x128xi1>, vector<8x128xf32>
      %213 = arith.addf %207, %212 : vector<8x128xf32>
      %c2_i32_83 = arith.constant 2 : i32
      %214 = vector.broadcast %c2_i32_83 : i32 to vector<8x128xi32>
      %215 = arith.cmpi eq, %200, %214 : vector<8x128xi32>
      %cst_84 = arith.constant 0.000000e+00 : f32
      %216 = vector.broadcast %184 : f32 to vector<8x128xf32>
      %217 = vector.broadcast %cst_84 : f32 to vector<8x128xf32>
      %218 = arith.select %215, %216, %217 : vector<8x128xi1>, vector<8x128xf32>
      %219 = arith.addf %213, %218 : vector<8x128xf32>
      %c3_i32_85 = arith.constant 3 : i32
      %220 = vector.broadcast %c3_i32_85 : i32 to vector<8x128xi32>
      %221 = arith.cmpi eq, %200, %220 : vector<8x128xi32>
      %cst_86 = arith.constant 0.000000e+00 : f32
      %222 = vector.broadcast %189 : f32 to vector<8x128xf32>
      %223 = vector.broadcast %cst_86 : f32 to vector<8x128xf32>
      %224 = arith.select %221, %222, %223 : vector<8x128xi1>, vector<8x128xf32>
      %225 = arith.addf %219, %224 : vector<8x128xf32>
      %c4_i32 = arith.constant 4 : i32
      %226 = vector.broadcast %c4_i32 : i32 to vector<8x128xi32>
      %227 = arith.cmpi eq, %200, %226 : vector<8x128xi32>
      %cst_87 = arith.constant 0.000000e+00 : f32
      %228 = vector.broadcast %194 : f32 to vector<8x128xf32>
      %229 = vector.broadcast %cst_87 : f32 to vector<8x128xf32>
      %230 = arith.select %227, %228, %229 : vector<8x128xi1>, vector<8x128xf32>
      %231 = arith.addf %225, %230 : vector<8x128xf32>
      %c5_i32 = arith.constant 5 : i32
      %232 = vector.broadcast %c5_i32 : i32 to vector<8x128xi32>
      %233 = arith.cmpi eq, %200, %232 : vector<8x128xi32>
      %cst_88 = arith.constant 0.000000e+00 : f32
      %234 = vector.broadcast %199 : f32 to vector<8x128xf32>
      %235 = vector.broadcast %cst_88 : f32 to vector<8x128xf32>
      %236 = arith.select %233, %234, %235 : vector<8x128xi1>, vector<8x128xf32>
      %237 = arith.addf %231, %236 : vector<8x128xf32>
      %c0_89 = arith.constant 0 : index
      %c0_90 = arith.constant 0 : index
      %c0_91 = arith.constant 0 : index
      %238 = vector.load %arg5[%c0_89, %c0_90, %c0_91] : memref<1x8x128xf32, #tpu.memory_space<vmem>>, vector<1x8x128xf32>
      %239 = vector.shape_cast %238 : vector<1x8x128xf32> to vector<8x128xf32>
      %240 = vector.shape_cast %237 : vector<8x128xf32> to vector<1x8x128xf32>
      tpu.vector_store %arg5[%c0_89, %c0_90, %c0_91], %240 {strides = array<i32>} : memref<1x8x128xf32, #tpu.memory_space<vmem>>, vector<1x8x128xf32>,
    } else {
    }
    return
  }
  func.func @transform_0(%arg0: i32, %arg1: i32) -> (i32, i32, i32, i32) {
    %c1_i32 = arith.constant 1 : i32
    %0 = arith.muli %arg0, %c1_i32 : i32
    %1 = arith.addi %0, %arg1 : i32
    %c0_i32 = arith.constant 0 : i32
    %c0_i32_0 = arith.constant 0 : i32
    %c0_i32_1 = arith.constant 0 : i32
    %c0_i32_2 = arith.constant 0 : i32
    return %c0_i32, %1, %c0_i32_0, %c0_i32_1 : i32, i32, i32, i32
  }
  func.func @transform_1(%arg0: i32, %arg1: i32) -> (i32, i32, i32, i32) {
    %c1_i32 = arith.constant 1 : i32
    %0 = arith.muli %arg0, %c1_i32 : i32
    %1 = arith.addi %0, %arg1 : i32
    %c0_i32 = arith.constant 0 : i32
    %c0_i32_0 = arith.constant 0 : i32
    %c0_i32_1 = arith.constant 0 : i32
    %c0_i32_2 = arith.constant 0 : i32
    return %c0_i32, %1, %c0_i32_0, %c0_i32_1 : i32, i32, i32, i32
  }
  func.func @transform_2(%arg0: i32, %arg1: i32) -> (i32, i32, i32, i32) {
    %c1_i32 = arith.constant 1 : i32
    %0 = arith.muli %arg0, %c1_i32 : i32
    %1 = arith.addi %0, %arg1 : i32
    %c0_i32 = arith.constant 0 : i32
    %c0_i32_0 = arith.constant 0 : i32
    %c0_i32_1 = arith.constant 0 : i32
    %c0_i32_2 = arith.constant 0 : i32
    return %c0_i32, %1, %c0_i32_0, %c0_i32_1 : i32, i32, i32, i32
  }
  func.func @transform_3(%arg0: i32, %arg1: i32) -> (i32, i32, i32) {
    %c0_i32 = arith.constant 0 : i32
    %c0_i32_0 = arith.constant 0 : i32
    %c0_i32_1 = arith.constant 0 : i32
    return %arg0, %c0_i32, %c0_i32_0 : i32, i32, i32
  }
}

</mosaic_0001>

<bundles_post_ra>
// kernel: yolo_loss.1
= control target key start
LH: loop header
LB: loop body
LE: loop exit
PB: predicated region body
PF: predicated region fallthrough
CT: control target
= control target key end

     0   :  { %v93_v41 = vlaneseq  ;;  %s559_s0 = inlined_call_operand.vmem [shape: f32[9,1,8,128], index: 0, kind: input, shape index: {}]   ;;  %s560_s1 = inlined_call_operand.vmem [shape: f32[6,1,8,128], index: 1, kind: input, shape index: {}]   ;;  %s561_s2 = inlined_call_operand.vmem [shape: f32[2,1,8,128], index: 2, kind: input, shape index: {}]   ;;  %s562_s3 = inlined_call_operand.vmem [shape: f32[1,8,128], index: 3, kind: output, shape index: {}]  }
   0x1   :  { %v425_v0 = vld [vmem:[%s559_s0 + $0x28] sm:$0xff]  ;;  %v430_v1 = vld [vmem:[%s559_s0 + $0x30] sm:$0xff]  ;;  %v435_v2 = vld [vmem:[%s559_s0 + $0x38] sm:$0xff] }
   0x2   :  { %v440_v3 = vld [vmem:[%s559_s0 + $0x40] sm:$0xff]  ;;  %v176_v4 = vmax.f32 %v425_v0, %v430_v1  ;;  %v454_v7 = vld [vmem:[%s559_s0 + $0x8] sm:$0xff]  ;;  %v471_v15 = vld [vmem:[%s559_s0 + $0x10] sm:$0xff]  ;;  %v94_v55 = vshrl.u32 %v93_v41, 7 }
   0x3   :  { %v177_v5 = vmax.f32 %v435_v2, %v440_v3  ;;  %v449_v6 = vld [vmem:[%s559_s0] sm:$0xff]  ;;  %v357_v10 = vmul.f32 -1.442695, %v454_v7  ;;  %v476_v16 = vld [vmem:[%s559_s0 + $0x18] sm:$0xff]  ;;  %v119_v22 = vmul.f32 1.442695, %v471_v15 }
   0x4   :  { %v356_v8 = vmul.f32 -1.442695, %v449_v6  ;;  %v481_v17 = vld [vmem:[%s559_s0 + $0x20] sm:$0xff]  ;;  %v121_v23 = vmul.f32 1.442695, %v476_v16  ;;  %v89_v25 = vld [vmem:[%s560_s1 + $0x28] sm:$0xff] }
   0x5   :  { %v457_v9 = vmax.f32 %v176_v4, %v177_v5  ;;  %v160_v24 = vand.u32 2147483647, %v481_v17  ;;  %v358_v28 = vtrunc.f32 %v89_v25  ;;  %v86_v29 = vld [vmem:[%s560_s1 + $0x10] sm:$0xff]  ;;  %v495_v32 = vld [vmem:[%s560_s1 + $0x18] sm:$0xff]  ;;  %v84_v38 = vld [vmem:[%s560_s1] sm:$0xff] }
   0x6   :  { %373 = vpow2.f32 %v356_v8  ;;  %v131_v36 = vmul.f32 0.5, %v86_v29  ;;  %v132_v39 = vmul.f32 0.5, %v495_v32  ;;  %v85_v42 = vld [vmem:[%s560_s1 + $0x8] sm:$0xff]  ;;  %v90_v45 = vld [vmem:[%s561_s2] sm:$0xff]  ;;  %v211_v62 = vsub.f32 %v449_v6, %v84_v38 }
   0x7   :  { %v179_v11 = vsub.f32 %v425_v0, %v457_v9  ;;  %v180_v12 = vsub.f32 %v430_v1, %v457_v9  ;;  %v181_v13 = vsub.f32 %v435_v2, %v457_v9  ;;  %v182_v14 = vsub.f32 %v440_v3, %v457_v9  ;;  %v91_v47 = vld [vmem:[%s561_s2 + $0x8] sm:$0xff] }
   0x8   :  { %375 = vpow2.f32 %v357_v10  ;;  %v161_v26 = vsub.f32 0.0, %v160_v24  ;;  %v497_v34 = vcvt.f32.s32 %v358_v28  ;;  %v133_v48 = vsub.f32 %v84_v38, %v131_v36 }
   0x9   :  { %v183_v18 = vmul.f32 1.442695, %v179_v11  ;;  %v185_v19 = vmul.f32 1.442695, %v180_v12  ;;  %v187_v20 = vmul.f32 1.442695, %v181_v13  ;;  %v134_v51 = vsub.f32 %v85_v42, %v132_v39 }
   0xa   :  { %v189_v21 = vmul.f32 1.442695, %v182_v14  ;;  %v162_v31 = vmul.f32 1.442695, %v161_v26  ;;  %vm198_vm0 = vcmp.eq.s32.totalorder %v497_v34, 0  ;;  %vm201_vm1 = vcmp.eq.s32.totalorder %v497_v34, 1 }
   0xb   :  { %377 = vpow2.f32 %v183_v18  ;;  %v135_v52 = vadd.f32 %v131_v36, %v84_v38  ;;  %v136_v53 = vadd.f32 %v132_v39, %v85_v42  ;;  %v199_v58 = vsel %vm198_vm0, %v425_v0, 0.0 }
   0xc   :  { %379 = vpow2.f32 %v185_v19  ;;  %vm204_vm2 = vcmp.eq.s32.totalorder %v497_v34, 2  ;;  %v202_v60 = vsel %vm201_vm1, %v430_v1, 0.0  ;;  %v212_v63 = vsub.f32 %v454_v7, %v85_v42 }
   0xd   :  { %381 = vpow2.f32 %v187_v20  ;;  %v148_v8 = vsub.f32 %v135_v52, %v133_v48  ;;  %v149_v10 = vsub.f32 %v136_v53, %v134_v51  ;;  %v519_v11 = vand.u32 127, %v93_v41 }
   0xe   :  { %383 = vpow2.f32 %v189_v21  ;;  %v100_v12 = vmul.u32 128, %v94_v55  ;;  %v203_v18 = vadd.f32 %v202_v60, %v199_v58  ;;  %v205_v1 = vsel %vm204_vm2, %v435_v2, 0.0 }
   0xf   :  { %385 = vpow2.f32 %v119_v22  ;;  %vm207_vm3 = vcmp.eq.s32.totalorder %v497_v34, 3  ;;  %v213_v6 = vsub.f32 %v471_v15, %v86_v29  ;;  %v215_v21 = vmul.f32 %v211_v62, %v211_v62  ;;  %v88_v15 = vld [vmem:[%s560_s1 + $0x20] sm:$0xff] }
  0x10   :  { %v374_v27 = vpop.eup %373  ;;  %387 = vpow2.f32 %v121_v23  ;;  %v216_v22 = vmul.f32 %v212_v63, %v212_v63  ;;  %v152_v26 = vmul.f32 %v149_v10, %v148_v8  ;;  %v206_v29 = vadd.f32 %v205_v1, %v203_v18 }
  0x11   :  { %v113_v30 = vadd.f32 1.0, %v374_v27  ;;  %v101_v27 = vadd.s32 %v100_v12, %v519_v11  ;;  %v217_v36 = vmul.f32 %v213_v6, %v213_v6  ;;  %vm103_vm5 = vcmp.eq.f32.partialorder %v88_v15, 1.0 }
  0x12   :  { %v376_v33 = vpop.eup %375  ;;  %v153_v41 = vand.u32 2147483647, %v152_v26  ;;  %vm105_vm7 = vcmp.eq.f32.partialorder %v88_v15, 0.0  ;;  %v159_v63 = vmax.f32 %v481_v17, 0.0  ;;  %vm309_vm10 = vcmp.eq.s32.totalorder %v519_v11, 0 }
  0x13   :  { %389 = vrcp.f32 %v113_v30  ;;  %v114_v35 = vadd.f32 1.0, %v376_v33  ;;  %vm102_vm4 = vcmp.lt.s32.totalorder %v101_v27, 126  ;;  %vm313_vm11 = vcmp.eq.s32.totalorder %v519_v11, 1 }
  0x14   :  { %391 = vpow2.f32 %v162_v31  ;;  %v208_v31 = vsel %vm207_vm3, %v440_v3, 0.0  ;;  %vm535_vm6 = vmand %vm102_vm4, %vm103_vm5  ;;  %vm317_vm12 = vcmp.eq.s32.totalorder %v519_v11, 2  ;;  %vm321_vm13 = vcmp.eq.s32.totalorder %v519_v11, 3 }
  0x15   :  { %v378_v37 = vpop.eup %377  ;;  %393 = vrcp.f32 %v114_v35  ;;  %v214_v35 = vsub.f32 %v476_v16, %v495_v32  ;;  %vm106_vm8 = vmand %vm102_vm4, %vm105_vm7  ;;  %vm325_vm14 = vcmp.eq.s32.totalorder %v519_v11, 4  ;;  %vm329_vm15 = vcmp.eq.s32.totalorder %v519_v11, 5 }
  0x16   :  { %v380_v40 = vpop.eup %379 }
  0x17   :  { %v382_v43 = vpop.eup %381  ;;  %v191_v44 = vadd.f32 %v380_v40, %v378_v37  ;;  %v219_v37 = vadd.f32 %v216_v22, %v215_v21 }
  0x18   :  { %v384_v46 = vpop.eup %383 }
  0x19   :  { %v386_v49 = vpop.eup %385  ;;  %v192_v50 = vadd.f32 %v382_v43, %v191_v44 }
  0x1a   :  { %v388_v54 = vpop.eup %387  ;;  %v123_v56 = vmul.f32 %v386_v49, %v90_v45  ;;  %v209_v45 = vadd.f32 %v208_v31, %v206_v29 }
  0x1b   :  { %v193_v57 = vadd.f32 %v384_v46, %v192_v50  ;;  %v124_v59 = vmul.f32 %v388_v54, %v91_v47  ;;  %v218_v46 = vmul.f32 %v214_v35, %v214_v35  ;;  %v220_v47 = vadd.f32 %v219_v37, %v217_v36 }
  0x1c   :  { %v125_v61 = vmul.f32 0.5, %v123_v56 }
  0x1d   :  { %v390_v4 = vpop.eup %389  ;;  %395 = vlog2.f32 %v193_v57  ;;  %v126_v5 = vmul.f32 0.5, %v124_v59 }
  0x1e   :  { %v127_v13 = vsub.f32 %v390_v4, %v125_v61  ;;  %v129_v0 = vadd.f32 %v390_v4, %v125_v61  ;;  %v392_v14 = vpop.eup %391  ;;  %v401_v61 = vmov 0.0  }
  0x1f   :  { %v394_v7 = vpop.eup %393  ;;  %v164_v30 = vadd.f32 1.0, %v392_v14  ;;  %v170_v58 = vand.u32 2147483647, %v392_v14  ;;  %v243_v62 = vsel %vm106_vm8, 1.0, %v401_v61  ;;  %v239_v18 = vsel %vm535_vm6, 1.0, %v401_v61 }
  0x20   :  { %v137_v19 = vmin.f32 %v129_v0, %v135_v52  ;;  %v139_v20 = vmax.f32 %v127_v13, %v133_v48  ;;  %v128_v23 = vsub.f32 %v394_v7, %v126_v5  ;;  %v130_v24 = vadd.f32 %v394_v7, %v126_v5 }
  0x21   :  { %v146_v25 = vsub.f32 %v129_v0, %v127_v13  ;;  %397 = vlog2.f32 %v164_v30  ;;  %vm171_vm9 = vcmp.lt.f32.partialorder %v170_v58, 0.0004427343 }
  0x22   :  { %v141_v28 = vsub.f32 %v137_v19, %v139_v20  ;;  %v138_v2 = vmin.f32 %v130_v24, %v136_v53  ;;  %v140_v33 = vmax.f32 %v128_v23, %v134_v51  ;;  %v147_v34 = vsub.f32 %v130_v24, %v128_v23 }
  0x23   :  { %v167_v51 = vmul.f32 -0.5, %v392_v14  ;;  %v221_v53 = vadd.f32 %v220_v47, %v218_v46 }
  0x24   :  { %v142_v38 = vsub.f32 %v138_v2, %v140_v33  ;;  %v143_v39 = vmax.f32 %v141_v28, 0.0  ;;  %v150_v40 = vmul.f32 %v147_v34, %v146_v25 }
  0x25   :  { %v168_v56 = vadd.f32 1.0, %v167_v51 }
  0x26   :  { %v144_v3 = vmax.f32 %v142_v38, 0.0  ;;  %v151_v43 = vand.u32 2147483647, %v150_v40 }
  0x27   :  { %v396_v42 = vpop.eup %395  ;;  %v169_v60 = vmul.f32 %v392_v14, %v168_v56 }
  0x28   :  { %v195_v44 = vmul.f32 0.6931472, %v396_v42  ;;  %v145_v48 = vmul.f32 %v144_v3, %v143_v39  ;;  %v154_v49 = vadd.f32 %v153_v41, %v151_v43 }
  0x2a   :  { %v196_v16 = vadd.f32 %v195_v44, %v457_v9  ;;  %v155_v50 = vsub.f32 %v154_v49, %v145_v48  ;;  %v235_v9 = vsel %vm535_vm6, %v221_v53, 0.0 }
  0x2b   :  { %v398_v57 = vpop.eup %397 }
  0x2c   :  { %v210_v52 = vsub.f32 %v196_v16, %v209_v45  ;;  %v156_v54 = vadd.f32 1e-06, %v155_v50  ;;  %v166_v59 = vmul.f32 0.6931472, %v398_v57 }
  0x2e   :  { %v231_v55 = vsel %vm535_vm6, %v210_v52, 0.0  ;;  %399 = vrcp.f32 %v156_v54  ;;  %v172_v4 = vsel %vm171_vm9, %v169_v60, %v166_v59 }
  0x2f   :  { %270 = vadd.xlane.f32.xlu1 %v231_v55  ;;  %v173_v10 = vadd.f32 %v172_v4, %v159_v63 }
  0x31   :  { %v227_v14 = vsel %vm106_vm8, %v173_v10, 0.0 }
  0x33   :  { %280 = vadd.xlane.f32.xlu1 %v235_v9 }
  0x37   :  { %300 = vadd.xlane.f32.xlu1 %v243_v62 }
  0x38   :  { %v400_v5 = vpop.eup %399 }
  0x39   :  { %v158_v8 = vmul.f32 %v400_v5, %v145_v48 }
  0x3b   :  { %v174_v12 = vmul.f32 %v158_v8, %v481_v17 }
  0x3d   :  { %v175_v13 = vsub.f32 %v173_v10, %v174_v12 }
  0x3f   :  { %v223_v0 = vsel %vm535_vm6, %v175_v13, 0.0 }
  0x40   :  { %250 = vadd.xlane.f32.xlu0 %v223_v0 }
  0x44   :  { %260 = vadd.xlane.f32.xlu0 %v227_v14 }
  0x48   :  { %290 = vadd.xlane.f32.xlu0 %v239_v18 }
  0xbc   :  { %v271_v1 = vpop.xlane.xlu1 %270 }
  0xbd   :  { %v272_v7 = vrot.slane %v271_v1, 4 }
  0xbf   :  { %v273_v21 = vadd.f32 %v272_v7, %v271_v1 }
  0xc0   :  { %v281_v6 = vpop.xlane.xlu1 %280 }
  0xc1   :  { %v282_v19 = vrot.slane %v281_v6, 4  ;;  %v274_v26 = vrot.slane %v273_v21, 2 }
  0xc3   :  { %v283_v24 = vadd.f32 %v282_v19, %v281_v6  ;;  %v275_v35 = vadd.f32 %v274_v26, %v273_v21 }
  0xc4   :  { %v301_v20 = vpop.xlane.xlu1 %300 }
  0xc5   :  { %v302_v23 = vrot.slane %v301_v20, 4  ;;  %v284_v31 = vrot.slane %v283_v24, 2  ;;  %v276_v43 = vrot.slane %v275_v35, 1 }
  0xc7   :  { %v303_v28 = vadd.f32 %v302_v23, %v301_v20  ;;  %v285_v39 = vadd.f32 %v284_v31, %v283_v24  ;;  %v277_v49 = vadd.f32 %v276_v43, %v275_v35 }
  0xc9   :  { %v304_v15 = vrot.slane %v303_v28, 2  ;;  %v286_v46 = vrot.slane %v285_v39, 1 }
  0xcb   :  { %v305_v3 = vadd.f32 %v304_v15, %v303_v28  ;;  %v287_v32 = vadd.f32 %v286_v46, %v285_v39 }
  0xcd   :  { %v251_v22 = vpop.xlane.xlu0 %250  ;;  %v306_v16 = vrot.slane %v305_v3, 1 }
  0xce   :  { %v252_v17 = vrot.slane %v251_v22, 4 }
  0xcf   :  { %v307_v52 = vadd.f32 %v306_v16, %v305_v3 }
  0xd0   :  { %v253_v25 = vadd.f32 %v252_v17, %v251_v22 }
  0xd1   :  { %v261_v27 = vpop.xlane.xlu0 %260 }
  0xd2   :  { %v254_v30 = vrot.slane %v253_v25, 2  ;;  %v262_v2 = vrot.slane %v261_v27, 4 }
  0xd4   :  { %v263_v33 = vadd.f32 %v262_v2, %v261_v27  ;;  %v255_v34 = vadd.f32 %v254_v30, %v253_v25 }
  0xd5   :  { %v291_v29 = vpop.xlane.xlu0 %290 }
  0xd6   :  { %v264_v36 = vrot.slane %v263_v33, 2  ;;  %v292_v37 = vrot.slane %v291_v29, 4  ;;  %v256_v38 = vrot.slane %v255_v34, 1 }
  0xd8   :  { %v293_v40 = vadd.f32 %v292_v37, %v291_v29  ;;  %v257_v41 = vadd.f32 %v256_v38, %v255_v34  ;;  %v265_v42 = vadd.f32 %v264_v36, %v263_v33 }
  0xda   :  { %v294_v44 = vrot.slane %v293_v40, 2  ;;  %360 = vpush %v257_v41  ;;  %v266_v45 = vrot.slane %v265_v42, 1 }
  0xdc   :  { %v295_v47 = vadd.f32 %v294_v44, %v293_v40  ;;  %v267_v48 = vadd.f32 %v266_v45, %v265_v42 }
  0xde   :  { %362 = vpush %v267_v48  ;;  %v296_v50 = vrot.slane %v295_v47, 1 }
  0xdf   :  { %364 = vpush %v277_v49 }
  0xe0   :  { %366 = vpush %v287_v32  ;;  %v297_v51 = vadd.f32 %v296_v50, %v295_v47 }
  0xe2   :  { %368 = vpush %v297_v51 }
  0xe3   :  { %370 = vpush %v307_v52 }
 0x10b   :  { %s361_s1 = spop %360 }
 0x10c   :  { %v310_v53 = vstv %s361_s1 }
 0x10d   :  { %v311_v55 = vsel %vm309_vm10, %v310_v53, 0.0 }
 0x10f   :  { %s363_s17 = spop %362 }
 0x110   :  { %v314_v54 = vstv %s363_s17  ;;  %s365_s18 = spop %364 }
 0x111   :  { %v315_v56 = vsel %vm313_vm11, %v314_v54, 0.0  ;;  %v318_v57 = vstv %s365_s18  ;;  %s367_s19 = spop %366 }
 0x112   :  { %v316_v58 = vadd.f32 %v315_v56, %v311_v55  ;;  %v322_v9 = vstv %s367_s19  ;;  %v319_v59 = vsel %vm317_vm12, %v318_v57, 0.0 }
 0x113   :  { %s369_s20 = spop %368  ;;  %v323_v62 = vsel %vm321_vm13, %v322_v9, 0.0 }
 0x114   :  { %v320_v60 = vadd.f32 %v319_v59, %v316_v58  ;;  %v326_v61 = vstv %s369_s20  ;;  %s371_s21 = spop %370 }
 0x115   :  { %v330_v4 = vstv %s371_s21  ;;  %v327_v5 = vsel %vm325_vm14, %v326_v61, 0.0 }
 0x116   :  { %v324_v63 = vadd.f32 %v323_v62, %v320_v60  ;;  %v331_v10 = vsel %vm329_vm15, %v330_v4, 0.0 }
 0x118   :  { %v328_v8 = vadd.f32 %v327_v5, %v324_v63 }
 0x11a   :  { %v332_v12 = vadd.f32 %v331_v10, %v328_v8 }
 0x11c   :  { %333 = vst [vmem:[%s562_s3] sm:$0xff] %v332_v12 }

</bundles_post_ra>
